<compile_context>
chip_gen: v6e
topology: v6e:2x2x1
jax: 0.10.0
libtpu: 0.0.40
codegen_flags: <defaults>
</compile_context>

<pallas_src>
import functools

import jax
import jax.numpy as jnp
import numpy as np
from jax.experimental import pallas as pl
from jax.experimental.pallas import tpu as pltpu


_VMEM_LIMIT_BYTES = 48 * 1024 * 1024  # legal on v5e/v6e (128 MiB) and v7x (64 MiB)


def _fused_gcn_kernel(L, HD, *refs):
    """One (batch-tile, head) grid step of the fused MultiGraphConvLayer forward.

    refs layout (L = layers):
      adj_ref    : (1, Bt, N, N) bf16  adjacency for this head / batch tile
      x_ref      : (Bt, N, D)    f32   gcn_inputs (resident across the heads axis)
      w_refs[l]  : (1, D+l*HD, HD) bf16  layer-l weight^T, this head
      b2_refs[l] : (1, 1, HD)    f32   layer-l bias * 2 (bias enters twice in torch)
      ws_ref     : (1, D)        f32   score_layer weight
      bs_ref     : (1, 1)        f32   score_layer bias
      wlin_ref   : (1, D, Dout)  bf16  this head's slab of the final Linear weight^T
      blin_ref   : (1, Dout)     f32   final Linear bias
      out_ref    : (Bt, N, Dout) f32   final Linear output (accumulated over heads)
      score_ref  : (1, Bt, N)    f32   pooling scores, lane-dense
      sum_scr    : (Bt*N, D+(L-1)*HD) bf16  write-once concat of (A@part + part)
      head_scr   : (Bt, N, D)    f32   write-once concat of g_l + x slab (head_out)
    """
    adj_ref, x_ref = refs[0], refs[1]
    w_refs = refs[2:2 + L]
    b2_refs = refs[2 + L:2 + 2 * L]
    ws_ref, bs_ref, wlin_ref, blin_ref = refs[2 + 2 * L:2 + 2 * L + 4]
    out_ref, score_ref, sum_scr, head_scr = refs[2 + 2 * L + 4:]

    h = pl.program_id(1)

    x = x_ref[...]                                   # (Bt, N, D) f32
    Bt, N, D = x.shape
    Dout = out_ref.shape[-1]

    adj = adj_ref[0]                                 # (Bt, N, N) bf16
    # hoisted exact reciprocal: one divide per grid step, outside the layer loop
    inv_denom = 1.0 / (jnp.sum(adj.astype(jnp.float32), axis=-1, keepdims=True) + 1.0)

    # adj @ x once; part 0 of the matmul LHS = (Ax + x), stored bf16 at offset 0.
    x_bf = x.astype(jnp.bfloat16)
    a_x = jnp.einsum('bnm,bmd->bnd', adj, x_bf,
                     preferred_element_type=jnp.float32)            # (Bt, N, D) f32
    sum_scr[:, 0:D] = (a_x + x).astype(jnp.bfloat16).reshape(Bt * N, D)

    for l in range(L):                               # static unroll; L is small
        k_in = D + l * HD
        w = w_refs[l][0]                             # (k_in, HD) bf16
        b2 = b2_refs[l][0]                           # (1, HD) f32
        # Linear(Ax) + Linear(outputs) == (Ax + outputs) @ W + 2*b, as one 2-D
        # MXU matmul with M = Bt*N over the write-once bf16 concat scratch.
        lhs = sum_scr[:, 0:k_in]                     # (Bt*N, k_in) bf16, static slice
        pre = jnp.dot(lhs, w, preferred_element_type=jnp.float32) + b2
        g = jnp.maximum(pre.reshape(Bt, N, HD) * inv_denom, 0.0)    # relu(AxW / denom)
        # head_out slab l: g_l + x[:, :, l*HD:(l+1)*HD]  (written exactly once)
        head_scr[:, :, l * HD:(l + 1) * HD] = g + x[:, :, l * HD:(l + 1) * HD]
        if l + 1 < L:
            a_g = jnp.einsum('bnm,bmh->bnh', adj, g.astype(jnp.bfloat16),
                             preferred_element_type=jnp.float32)
            sum_scr[:, D + l * HD:D + (l + 1) * HD] = (
                (a_g + g).astype(jnp.bfloat16).reshape(Bt * N, HD))
        # TODO(synk): nn.Dropout(gcn_dropout) treated as identity (eval mode / p=0).

    head_out = head_scr[...]                         # (Bt, N, D) f32

    # score_layer(head_out): broadcast-mul + lane reduce; lane-dense (1, Bt, N).
    score = jnp.sum(head_out * ws_ref[...], axis=-1) + bs_ref[0, 0]
    score_ref[...] = score[None]

    # Fused final Linear: out = sum_h head_out_h @ Wlin^T[hD:(h+1)D] + b.
    # Output block index is constant over the heads axis -> accumulate in place.
    @pl.when(h == 0)
    def _():
        out_ref[...] = jnp.broadcast_to(blin_ref[...], out_ref.shape)

    contrib = jnp.dot(head_out.reshape(Bt * N, D).astype(jnp.bfloat16), wlin_ref[0],
                      preferred_element_type=jnp.float32)
    out_ref[...] += contrib.reshape(Bt, N, Dout)


def _pick_batch_tile(B, N, D, HD, L, Dout, budget_bytes=40 * 1024 * 1024):
    """Largest legal batch tile whose per-step VMEM working set fits the budget.

    Legal: Bt == B or Bt % 8 == 0 (the (heads, B, N) score block needs its
    second-to-last dim 8-aligned or full).  Among fitting tiles, prefer one that
    leaves >= 2 batch tiles so the "parallel" grid axis can feed both of v7x's
    TensorCores (harmless on single-TC v5e/v6e).
    """
    cat_w = D + (L - 1) * HD
    def est(bt):
        adj = 2 * bt * N * N * 2                     # bf16 adj, double-buffered
        x_in = 2 * bt * N * D * 4                    # f32 inputs (double-buffered)
        out = 2 * bt * N * Dout * 4                  # resident f32 accumulator + wb
        scr = bt * N * cat_w * 2 + bt * N * D * 4    # bf16 concat + f32 head scratch
        live = 4 * bt * N * max(N, cat_w) * 4        # in-flight f32 temporaries
        return adj + x_in + out + scr + live + (2 << 20)

    cands = [bt for bt in range(8, B + 1, 8) if B % bt == 0]
    fitting = [bt for bt in cands if est(bt) <= budget_bytes]
    if fitting:
        multi = [bt for bt in fitting if B // bt >= 2]
        return max(multi) if multi else max(fitting)
    if cands:                                        # nothing fits: smallest legal tile
        return cands[0]
    return B                                         # tiny / odd batch: whole batch


def multi_graph_conv_layer(adj_stack, gcn_inputs, src_mask, params,
                           layers, heads, pooling_ratio, batch_tile=None):
    B, N, D = gcn_inputs.shape
    assert D % layers == 0, "head_dim = mem_dim // layers must be exact"
    HD = D // layers
    Dout = params["b_lin"].shape[-1]
    cat_w = D + (layers - 1) * HD

    Bt = _pick_batch_tile(B, N, D, HD, layers, Dout) if batch_tile is None else batch_tile
    assert B % Bt == 0
    n_bt = B // Bt

    # bf16 adjacency in HBM halves the dominant heads*B*N^2 read.
    adj_bf = adj_stack.astype(jnp.bfloat16)
    x_f32 = gcn_inputs.astype(jnp.float32)

    kernel = functools.partial(_fused_gcn_kernel, layers, HD)

    in_specs = [
        pl.BlockSpec((1, Bt, N, N), lambda bt, h: (h, bt, 0, 0)),   # adj (this head)
        pl.BlockSpec((Bt, N, D), lambda bt, h: (bt, 0, 0)),         # x (resident over heads)
    ]
    for l in range(layers):                                         # exact-width weights
        din = D + l * HD
        in_specs.append(pl.BlockSpec((1, din, HD), lambda bt, h: (h, 0, 0)))
    for _ in range(layers):                                         # doubled biases
        in_specs.append(pl.BlockSpec((1, 1, HD), lambda bt, h: (h, 0, 0)))
    in_specs += [
        pl.BlockSpec((1, D), lambda bt, h: (0, 0)),                 # w_score
        pl.BlockSpec((1, 1), lambda bt, h: (0, 0)),                 # b_score
        pl.BlockSpec((1, D, Dout), lambda bt, h: (h, 0, 0)),        # w_lin slab (head h)
        pl.BlockSpec((1, Dout), lambda bt, h: (0, 0)),              # b_lin
    ]
    out_specs = [
        pl.BlockSpec((Bt, N, Dout), lambda bt, h: (bt, 0, 0)),      # heads-accumulated out
        pl.BlockSpec((1, Bt, N), lambda bt, h: (h, bt, 0)),         # lane-dense scores
    ]
    scratch_shapes = [
        pltpu.VMEM((Bt * N, cat_w), jnp.bfloat16),                  # write-once concat LHS
        pltpu.VMEM((Bt, N, D), jnp.float32),                        # head_out assembly
    ]

    out, scores = pl.pallas_call(
        kernel,
        out_shape=(jax.ShapeDtypeStruct((B, N, Dout), jnp.float32),
                   jax.ShapeDtypeStruct((heads, B, N), jnp.float32)),
        grid_spec=pltpu.PrefetchScalarGridSpec(
            num_scalar_prefetch=0,
            grid=(n_bt, heads),
            in_specs=in_specs,
            out_specs=out_specs,
            scratch_shapes=scratch_shapes,
        ),
        compiler_params=pltpu.CompilerParams(
            # heads is a reduction (output-accumulator) axis -> arbitrary;
            # batch tiles are independent -> parallel (v7x dual-TC sharding).
            dimension_semantics=("parallel", "arbitrary"),
            vmem_limit_bytes=_VMEM_LIMIT_BYTES),
    )(adj_bf, x_f32,
      *[params["w_list"][l] for l in range(layers)],
      *[params["b2_list"][l] for l in range(layers)],
      params["w_score"], params["b_score"], params["w_lin3"], params["b_lin"])

    src_mask_out = dynamic_pool_multi(scores, src_mask, 1.0 - pooling_ratio)
    return adj_stack, out, src_mask_out


def dynamic_pool_multi(scores, src_mask, drop_ratio):
    """Dynamic_Pool_Multi: per head, mark the K smallest-score nodes True, then
    OR across heads together with the original src_mask (torch sums the per-head
    clones; nonzero == OR).  Plain-JAX glue (data-dependent top-k / scatter)."""
    heads, B, N = scores.shape
    K = int(drop_ratio * N)
    if K == 0:
        return src_mask
    _, idx = jax.lax.top_k(-scores.reshape(heads * B, N), K)        # K smallest
    sel = jnp.sum(jax.nn.one_hot(idx, N, dtype=jnp.float32), axis=1) > 0
    any_sel = jnp.any(sel.reshape(heads, B, N), axis=0)             # OR over heads
    return jnp.logical_or(src_mask, any_sel[:, None, :])


# ---------------- parameter init (deterministic, nn.Linear-style uniform) -----------


def _linear_params(key, fan_in, fan_out):
    kw, kb = jax.random.split(key)
    bound = 1.0 / np.sqrt(fan_in)
    w = jax.random.uniform(kw, (fan_out, fan_in), jnp.float32, -bound, bound)
    b = jax.random.uniform(kb, (fan_out,), jnp.float32, -bound, bound)
    return w, b


def init_params(key, mem_dim, layers, heads):
    assert mem_dim % layers == 0, "head_dim = mem_dim // layers must be exact"
    HD = mem_dim // layers
    keys = jax.random.split(key, heads * layers + 2)

    w_list = [np.zeros((heads, mem_dim + HD * l, HD), np.float32) for l in range(layers)]
    b2_list = [np.zeros((heads, 1, HD), np.float32) for _ in range(layers)]
    for i in range(heads):
        for j in range(layers):
            din = mem_dim + HD * j
            w, b = _linear_params(keys[i * layers + j], din, HD)
            w_list[j][i] = np.asarray(w).T                 # exact width, no zero pad
            b2_list[j][i, 0] = 2.0 * np.asarray(b)         # bias enters twice (exact in f32)

    w_lin, b_lin = _linear_params(keys[-2], mem_dim * heads, mem_dim)
    w_score, b_score = _linear_params(keys[-1], mem_dim, 1)     # torch shape (1, mem_dim)
    w_lin3 = jnp.asarray(w_lin).T.reshape(heads, mem_dim, mem_dim)

    return dict(
        # bf16 MXU operands (kernel and reference share the same bf16 values):
        w_list=[jnp.asarray(w).astype(jnp.bfloat16) for w in w_list],
        w_lin3=w_lin3.astype(jnp.bfloat16),
        # f32 additive / elementwise parameters:
        b2_list=[jnp.asarray(b) for b in b2_list],
        w_score=jnp.asarray(w_score), b_score=jnp.asarray(b_score).reshape(1, 1),
        b_lin=jnp.asarray(b_lin)[None, :],
    )


# ---------------- pure-JAX reference (bf16-matched, for correctness check) ----------


def ref_forward(adj_stack, x, src_mask, params, layers, heads, pooling_ratio):
    """Torch-structured reference with the same bf16 MXU-operand cast points as
    the kernel (f32 accumulation), so parity holds at ~f32-ulp tolerance."""
    B, N, D = x.shape
    HD = D // layers
    adj_bf = adj_stack.astype(jnp.bfloat16)
    x_bf = x.astype(jnp.bfloat16)

    multi, scores = [], []
    for h in range(heads):
        adj = adj_bf[h]
        inv_denom = 1.0 / (jnp.sum(adj.astype(jnp.float32), -1, keepdims=True) + 1.0)
        a_x = jnp.einsum('bnm,bmd->bnd', adj, x_bf, preferred_element_type=jnp.float32)
        lhs_parts = [(a_x + x).astype(jnp.bfloat16)]
        outs = []
        for l in range(layers):
            W = params["w_list"][l][h]                     # (D+l*HD, HD) bf16
            b2 = params["b2_list"][l][h]                   # (1, HD) f32
            lhs = jnp.concatenate(lhs_parts, axis=-1) if l else lhs_parts[0]
            pre = jnp.einsum('bnk,kh->bnh', lhs, W,
                             preferred_element_type=jnp.float32) + b2
            g = jnp.maximum(pre * inv_denom, 0.0)
            outs.append(g)
            if l + 1 < layers:
                a_g = jnp.einsum('bnm,bmh->bnh', adj, g.astype(jnp.bfloat16),
                                 preferred_element_type=jnp.float32)
                lhs_parts.append((a_g + g).astype(jnp.bfloat16))
        head_out = jnp.concatenate(outs, axis=-1) + x
        multi.append(head_out)
        scores.append(jnp.sum(head_out * params["w_score"][0], -1)
                      + params["b_score"][0, 0])

    Dout = params["b_lin"].shape[-1]
    out = jnp.broadcast_to(params["b_lin"], (B, N, Dout))
    for h in range(heads):
        out = out + jnp.einsum('bnd,de->bne', multi[h].astype(jnp.bfloat16),
                               params["w_lin3"][h], preferred_element_type=jnp.float32)
    mask = dynamic_pool_multi(jnp.stack(scores), src_mask, 1.0 - pooling_ratio)
    return out, mask


if __name__ == "__main__":
    B, N, mem_dim, layers, heads = 2, 16, 32, 2, 3
    pooling_ratio = 0.5        # args.pooling_ratio; args.gcn_dropout treated as 0 (eval)

    key = jax.random.PRNGKey(0)
    k_adj, k_x, k_mask, k_params = jax.random.split(key, 4)
    adj_stack = jax.random.uniform(k_adj, (heads, B, N, N), jnp.float32)    # adj_list
    gcn_inputs = jax.random.normal(k_x, (B, N, mem_dim), jnp.float32)
    src_mask = jax.random.bernoulli(k_mask, 0.5, (B, 1, N))
    params = init_params(k_params, mem_dim, layers, heads)

    adj_out, out, mask_out = multi_graph_conv_layer(
        adj_stack, gcn_inputs, src_mask, params, layers, heads, pooling_ratio)
    out = jax.block_until_ready(out)
    mask_out = jax.block_until_ready(mask_out)

    ref_out, ref_mask = ref_forward(adj_stack, gcn_inputs, src_mask, params,
                                    layers, heads, pooling_ratio)
    np.testing.assert_allclose(np.asarray(out), np.asarray(ref_out),
                               rtol=1e-3, atol=1e-3)
    assert bool(jnp.all(mask_out == ref_mask))
    print("KERNEL_OK")
</pallas_src>

<mosaic_0001>
module attributes {stable_mosaic.version = 11 : i64} {
  func.func @_fused_gcn_kernel(%arg0: i32, %arg1: i32, %arg2: memref<1x2x16x16xbf16, #tpu.memory_space<vmem>>, %arg3: memref<2x16x32xf32, #tpu.memory_space<vmem>>, %arg4: memref<1x32x16xbf16, #tpu.memory_space<vmem>>, %arg5: memref<1x48x16xbf16, #tpu.memory_space<vmem>>, %arg6: memref<1x1x16xf32, #tpu.memory_space<vmem>>, %arg7: memref<1x1x16xf32, #tpu.memory_space<vmem>>, %arg8: memref<1x32xf32, #tpu.memory_space<vmem>>, %arg9: memref<1x1xf32, #tpu.memory_space<vmem>>, %arg10: memref<1x32x32xbf16, #tpu.memory_space<vmem>>, %arg11: memref<1x32xf32, #tpu.memory_space<vmem>>, %arg12: memref<2x16x32xf32, #tpu.memory_space<vmem>>, %arg13: memref<1x2x16xf32, #tpu.memory_space<vmem>>, %arg14: memref<32x48xbf16, #tpu.memory_space<vmem>>, %arg15: memref<2x16x32xf32, #tpu.memory_space<vmem>>) attributes {dimension_semantics = [#tpu.dimension_semantics<parallel>, #tpu.dimension_semantics<arbitrary>], iteration_bounds = array<i64: 1, 3>, scalar_prefetch = 0 : i64, scratch_operands = 2 : i64, tpu.core_type = #tpu.core_type<tc>, window_params = [{transform_indices = @transform_0, window_bounds = array<i64: 1, 2, 16, 16>}, {transform_indices = @transform_1, window_bounds = array<i64: 2, 16, 32>}, {transform_indices = @transform_2, window_bounds = array<i64: 1, 32, 16>}, {transform_indices = @transform_3, window_bounds = array<i64: 1, 48, 16>}, {transform_indices = @transform_4, window_bounds = array<i64: 1, 1, 16>}, {transform_indices = @transform_5, window_bounds = array<i64: 1, 1, 16>}, {pipeline_mode = #tpu.pipeline_mode<synchronous>, transform_indices = @transform_6, window_bounds = array<i64: 1, 32>}, {pipeline_mode = #tpu.pipeline_mode<synchronous>, transform_indices = @transform_7, window_bounds = array<i64: 1, 1>}, {transform_indices = @transform_8, window_bounds = array<i64: 1, 32, 32>}, {pipeline_mode = #tpu.pipeline_mode<synchronous>, transform_indices = @transform_9, window_bounds = array<i64: 1, 32>}, {transform_indices = @transform_10, window_bounds = array<i64: 2, 16, 32>}, {transform_indices = @transform_11, window_bounds = array<i64: 1, 2, 16>}]} {
    %c0 = arith.constant 0 : index
    %c0_0 = arith.constant 0 : index
    %c0_1 = arith.constant 0 : index
    %0 = vector.load %arg3[%c0, %c0_0, %c0_1] : memref<2x16x32xf32, #tpu.memory_space<vmem>>, vector<2x16x32xf32>
    %c0_2 = arith.constant 0 : index
    %c0_3 = arith.constant 0 : index
    %c0_4 = arith.constant 0 : index
    %c0_5 = arith.constant 0 : index
    %1 = vector.load %arg2[%c0_2, %c0_3, %c0_4, %c0_5] : memref<1x2x16x16xbf16, #tpu.memory_space<vmem>>, vector<1x2x16x16xbf16>
    %2 = vector.shape_cast %1 : vector<1x2x16x16xbf16> to vector<2x16x16xbf16>
    %3 = arith.extf %2 : vector<2x16x16xbf16> to vector<2x16x16xf32>
    %cst = arith.constant dense<0.000000e+00> : vector<2x16xf32>
    %4 = vector.multi_reduction <add>, %3, %cst [2] : vector<2x16x16xf32> to vector<2x16xf32>
    %5 = vector.shape_cast %4 : vector<2x16xf32> to vector<2x16x1xf32>
    %cst_6 = arith.constant 1.000000e+00 : f32
    %6 = vector.broadcast %cst_6 : f32 to vector<2x16x1xf32>
    %7 = arith.addf %5, %6 : vector<2x16x1xf32>
    %cst_7 = arith.constant 1.000000e+00 : f32
    %8 = vector.broadcast %cst_7 : f32 to vector<2x16x1xf32>
    %9 = arith.divf %8, %7 : vector<2x16x1xf32>
    %10 = arith.truncf %0 : vector<2x16x32xf32> to vector<2x16x32xbf16>
    "tpu.trace_start"() <{level = 10 : i32, message = "bnm,bmd->bnd"}> : () -> ()
    %cst_8 = arith.constant dense<0.000000e+00> : vector<2x16x32xf32>
    %11 = tpu.matmul %2, %10, %cst_8 {dimension_numbers = #tpu.dot_dimension_numbers<[2], [1], [1], [2], [0, 0, 0, 1, 1, 2], [0], [0]>} : vector<2x16x16xbf16>, vector<2x16x32xbf16>, vector<2x16x32xf32> -> vector<2x16x32xf32>
    "tpu.trace_stop"() : () -> ()
    %12 = arith.addf %11, %0 : vector<2x16x32xf32>
    %13 = arith.truncf %12 : vector<2x16x32xf32> to vector<2x16x32xbf16>
    %14 = vector.shape_cast %13 : vector<2x16x32xbf16> to vector<32x32xbf16>
    %c0_9 = arith.constant 0 : index
    %c0_10 = arith.constant 0 : index
    %15 = vector.load %arg14[%c0_9, %c0_10] : memref<32x48xbf16, #tpu.memory_space<vmem>>, vector<32x32xbf16>
    tpu.vector_store %arg14[%c0_9, %c0_10], %14 {strides = array<i32>} : memref<32x48xbf16, #tpu.memory_space<vmem>>, vector<32x32xbf16>,
    %c0_11 = arith.constant 0 : index
    %c0_12 = arith.constant 0 : index
    %c0_13 = arith.constant 0 : index
    %16 = vector.load %arg4[%c0_11, %c0_12, %c0_13] : memref<1x32x16xbf16, #tpu.memory_space<vmem>>, vector<1x32x16xbf16>
    %17 = vector.shape_cast %16 : vector<1x32x16xbf16> to vector<32x16xbf16>
    %c0_14 = arith.constant 0 : index
    %c0_15 = arith.constant 0 : index
    %c0_16 = arith.constant 0 : index
    %18 = vector.load %arg6[%c0_14, %c0_15, %c0_16] : memref<1x1x16xf32, #tpu.memory_space<vmem>>, vector<1x1x16xf32>
    %19 = vector.shape_cast %18 : vector<1x1x16xf32> to vector<1x16xf32>
    %c0_17 = arith.constant 0 : index
    %c0_18 = arith.constant 0 : index
    %20 = vector.load %arg14[%c0_17, %c0_18] : memref<32x48xbf16, #tpu.memory_space<vmem>>, vector<32x32xbf16>
    %cst_19 = arith.constant dense<0.000000e+00> : vector<32x16xf32>
    %21 = tpu.matmul %20, %17, %cst_19 {dimension_numbers = #tpu.dot_dimension_numbers<[1], [0], [0], [1], [0, 0, 1, 1], [], []>} : vector<32x32xbf16>, vector<32x16xbf16>, vector<32x16xf32> -> vector<32x16xf32>
    %22 = vector.broadcast %19 : vector<1x16xf32> to vector<32x16xf32>
    %23 = arith.addf %21, %22 : vector<32x16xf32>
    %24 = vector.shape_cast %23 : vector<32x16xf32> to vector<2x16x16xf32>
    %25 = vector.broadcast %9 : vector<2x16x1xf32> to vector<2x16x16xf32>
    %26 = arith.mulf %24, %25 : vector<2x16x16xf32>
    %cst_20 = arith.constant 0.000000e+00 : f32
    %27 = vector.broadcast %cst_20 : f32 to vector<2x16x16xf32>
    %28 = arith.maximumf %26, %27 : vector<2x16x16xf32>
    %29 = vector.extract_strided_slice %0 {offsets = [0, 0, 0], sizes = [2, 16, 16], strides = [1, 1, 1]} : vector<2x16x32xf32> to vector<2x16x16xf32>
    %30 = arith.addf %28, %29 : vector<2x16x16xf32>
    %c0_21 = arith.constant 0 : index
    %c0_22 = arith.constant 0 : index
    %c0_23 = arith.constant 0 : index
    %31 = vector.load %arg15[%c0_21, %c0_22, %c0_23] : memref<2x16x32xf32, #tpu.memory_space<vmem>>, vector<2x16x16xf32>
    tpu.vector_store %arg15[%c0_21, %c0_22, %c0_23], %30 {strides = array<i32>} : memref<2x16x32xf32, #tpu.memory_space<vmem>>, vector<2x16x16xf32>,
    %32 = arith.truncf %28 : vector<2x16x16xf32> to vector<2x16x16xbf16>
    "tpu.trace_start"() <{level = 10 : i32, message = "bnm,bmh->bnh"}> : () -> ()
    %cst_24 = arith.constant dense<0.000000e+00> : vector<2x16x16xf32>
    %33 = tpu.matmul %2, %32, %cst_24 {dimension_numbers = #tpu.dot_dimension_numbers<[2], [1], [1], [2], [0, 0, 0, 1, 1, 2], [0], [0]>} : vector<2x16x16xbf16>, vector<2x16x16xbf16>, vector<2x16x16xf32> -> vector<2x16x16xf32>
    "tpu.trace_stop"() : () -> ()
    %34 = arith.addf %33, %28 : vector<2x16x16xf32>
    %35 = arith.truncf %34 : vector<2x16x16xf32> to vector<2x16x16xbf16>
    %36 = vector.shape_cast %35 : vector<2x16x16xbf16> to vector<32x16xbf16>
    %c0_25 = arith.constant 0 : index
    %c32 = arith.constant 32 : index
    %37 = vector.load %arg14[%c0_25, %c32] : memref<32x48xbf16, #tpu.memory_space<vmem>>, vector<32x16xbf16>
    tpu.vector_store %arg14[%c0_25, %c32], %36 {strides = array<i32>} : memref<32x48xbf16, #tpu.memory_space<vmem>>, vector<32x16xbf16>,
    %c0_26 = arith.constant 0 : index
    %c0_27 = arith.constant 0 : index
    %c0_28 = arith.constant 0 : index
    %38 = vector.load %arg5[%c0_26, %c0_27, %c0_28] : memref<1x48x16xbf16, #tpu.memory_space<vmem>>, vector<1x48x16xbf16>
    %39 = vector.shape_cast %38 : vector<1x48x16xbf16> to vector<48x16xbf16>
    %c0_29 = arith.constant 0 : index
    %c0_30 = arith.constant 0 : index
    %c0_31 = arith.constant 0 : index
    %40 = vector.load %arg7[%c0_29, %c0_30, %c0_31] : memref<1x1x16xf32, #tpu.memory_space<vmem>>, vector<1x1x16xf32>
    %41 = vector.shape_cast %40 : vector<1x1x16xf32> to vector<1x16xf32>
    %c0_32 = arith.constant 0 : index
    %c0_33 = arith.constant 0 : index
    %42 = vector.load %arg14[%c0_32, %c0_33] : memref<32x48xbf16, #tpu.memory_space<vmem>>, vector<32x48xbf16>
    %cst_34 = arith.constant dense<0.000000e+00> : vector<32x16xf32>
    %43 = tpu.matmul %42, %39, %cst_34 {dimension_numbers = #tpu.dot_dimension_numbers<[1], [0], [0], [1], [0, 0, 1, 1], [], []>} : vector<32x48xbf16>, vector<48x16xbf16>, vector<32x16xf32> -> vector<32x16xf32>
    %44 = vector.broadcast %41 : vector<1x16xf32> to vector<32x16xf32>
    %45 = arith.addf %43, %44 : vector<32x16xf32>
    %46 = vector.shape_cast %45 : vector<32x16xf32> to vector<2x16x16xf32>
    %47 = vector.broadcast %9 : vector<2x16x1xf32> to vector<2x16x16xf32>
    %48 = arith.mulf %46, %47 : vector<2x16x16xf32>
    %cst_35 = arith.constant 0.000000e+00 : f32
    %49 = vector.broadcast %cst_35 : f32 to vector<2x16x16xf32>
    %50 = arith.maximumf %48, %49 : vector<2x16x16xf32>
    %51 = vector.extract_strided_slice %0 {offsets = [0, 0, 16], sizes = [2, 16, 16], strides = [1, 1, 1]} : vector<2x16x32xf32> to vector<2x16x16xf32>
    %52 = arith.addf %50, %51 : vector<2x16x16xf32>
    %c0_36 = arith.constant 0 : index
    %c0_37 = arith.constant 0 : index
    %c16 = arith.constant 16 : index
    %53 = vector.load %arg15[%c0_36, %c0_37, %c16] : memref<2x16x32xf32, #tpu.memory_space<vmem>>, vector<2x16x16xf32>
    tpu.vector_store %arg15[%c0_36, %c0_37, %c16], %52 {strides = array<i32>} : memref<2x16x32xf32, #tpu.memory_space<vmem>>, vector<2x16x16xf32>,
    %c0_38 = arith.constant 0 : index
    %c0_39 = arith.constant 0 : index
    %c0_40 = arith.constant 0 : index
    %54 = vector.load %arg15[%c0_38, %c0_39, %c0_40] : memref<2x16x32xf32, #tpu.memory_space<vmem>>, vector<2x16x32xf32>
    %c0_41 = arith.constant 0 : index
    %c0_42 = arith.constant 0 : index
    %55 = vector.load %arg8[%c0_41, %c0_42] : memref<1x32xf32, #tpu.memory_space<vmem>>, vector<1x32xf32>
    %56 = vector.shape_cast %55 : vector<1x32xf32> to vector<1x1x32xf32>
    %57 = vector.broadcast %56 : vector<1x1x32xf32> to vector<2x16x32xf32>
    %58 = arith.mulf %54, %57 : vector<2x16x32xf32>
    %cst_43 = arith.constant dense<0.000000e+00> : vector<2x16xf32>
    %59 = vector.multi_reduction <add>, %58, %cst_43 [2] : vector<2x16x32xf32> to vector<2x16xf32>
    %c0_44 = arith.constant 0 : index
    %c0_45 = arith.constant 0 : index
    %60 = vector.load %arg9[%c0_44, %c0_45] : memref<1x1xf32, #tpu.memory_space<vmem>>, vector<1x1xf32>
    %61 = vector.extract %60[0, 0] : f32 from vector<1x1xf32>
    %62 = vector.broadcast %61 : f32 to vector<2x16xf32>
    %63 = arith.addf %59, %62 : vector<2x16xf32>
    %64 = vector.shape_cast %63 : vector<2x16xf32> to vector<1x2x16xf32>
    %c0_46 = arith.constant 0 : index
    %c0_47 = arith.constant 0 : index
    %c0_48 = arith.constant 0 : index
    %65 = vector.load %arg13[%c0_46, %c0_47, %c0_48] : memref<1x2x16xf32, #tpu.memory_space<vmem>>, vector<1x2x16xf32>
    tpu.vector_store %arg13[%c0_46, %c0_47, %c0_48], %64 {strides = array<i32>} : memref<1x2x16xf32, #tpu.memory_space<vmem>>, vector<1x2x16xf32>,
    %c0_i32 = arith.constant 0 : i32
    %66 = arith.cmpi eq, %arg1, %c0_i32 : i32
    %67 = arith.extui %66 : i1 to i32
    %c0_i32_49 = arith.constant 0 : i32
    %68 = arith.cmpi ne, %67, %c0_i32_49 : i32
    scf.if %68 {
      %c0_60 = arith.constant 0 : index
      %c0_61 = arith.constant 0 : index
      %78 = vector.load %arg11[%c0_60, %c0_61] : memref<1x32xf32, #tpu.memory_space<vmem>>, vector<1x32xf32>
      %79 = vector.shape_cast %78 : vector<1x32xf32> to vector<1x1x32xf32>
      %80 = vector.broadcast %79 : vector<1x1x32xf32> to vector<2x16x32xf32>
      %c0_62 = arith.constant 0 : index
      %c0_63 = arith.constant 0 : index
      %c0_64 = arith.constant 0 : index
      %81 = vector.load %arg12[%c0_62, %c0_63, %c0_64] : memref<2x16x32xf32, #tpu.memory_space<vmem>>, vector<2x16x32xf32>
      tpu.vector_store %arg12[%c0_62, %c0_63, %c0_64], %80 {strides = array<i32>} : memref<2x16x32xf32, #tpu.memory_space<vmem>>, vector<2x16x32xf32>,
    } else {
    }
    %69 = vector.shape_cast %54 : vector<2x16x32xf32> to vector<32x32xf32>
    %70 = arith.truncf %69 : vector<32x32xf32> to vector<32x32xbf16>
    %c0_50 = arith.constant 0 : index
    %c0_51 = arith.constant 0 : index
    %c0_52 = arith.constant 0 : index
    %71 = vector.load %arg10[%c0_50, %c0_51, %c0_52] : memref<1x32x32xbf16, #tpu.memory_space<vmem>>, vector<1x32x32xbf16>
    %72 = vector.shape_cast %71 : vector<1x32x32xbf16> to vector<32x32xbf16>
    %cst_53 = arith.constant dense<0.000000e+00> : vector<32x32xf32>
    %73 = tpu.matmul %70, %72, %cst_53 {dimension_numbers = #tpu.dot_dimension_numbers<[1], [0], [0], [1], [0, 0, 1, 1], [], []>} : vector<32x32xbf16>, vector<32x32xbf16>, vector<32x32xf32> -> vector<32x32xf32>
    %c0_54 = arith.constant 0 : index
    %c0_55 = arith.constant 0 : index
    %c0_56 = arith.constant 0 : index
    %74 = vector.load %arg12[%c0_54, %c0_55, %c0_56] : memref<2x16x32xf32, #tpu.memory_space<vmem>>, vector<2x16x32xf32>
    %75 = vector.shape_cast %73 : vector<32x32xf32> to vector<2x16x32xf32>
    %76 = arith.addf %74, %75 : vector<2x16x32xf32>
    %c0_57 = arith.constant 0 : index
    %c0_58 = arith.constant 0 : index
    %c0_59 = arith.constant 0 : index
    %77 = vector.load %arg12[%c0_57, %c0_58, %c0_59] : memref<2x16x32xf32, #tpu.memory_space<vmem>>, vector<2x16x32xf32>
    tpu.vector_store %arg12[%c0_57, %c0_58, %c0_59], %76 {strides = array<i32>} : memref<2x16x32xf32, #tpu.memory_space<vmem>>, vector<2x16x32xf32>,
    return
  }
  func.func @transform_0(%arg0: i32, %arg1: i32) -> (i32, i32, i32, i32) {
    %c0_i32 = arith.constant 0 : i32
    %c0_i32_0 = arith.constant 0 : i32
    %c0_i32_1 = arith.constant 0 : i32
    return %arg1, %arg0, %c0_i32, %c0_i32_0 : i32, i32, i32, i32
  }
  func.func @transform_1(%arg0: i32, %arg1: i32) -> (i32, i32, i32) {
    %c0_i32 = arith.constant 0 : i32
    %c0_i32_0 = arith.constant 0 : i32
    %c0_i32_1 = arith.constant 0 : i32
    return %arg0, %c0_i32, %c0_i32_0 : i32, i32, i32
  }
  func.func @transform_2(%arg0: i32, %arg1: i32) -> (i32, i32, i32) {
    %c0_i32 = arith.constant 0 : i32
    %c0_i32_0 = arith.constant 0 : i32
    %c0_i32_1 = arith.constant 0 : i32
    return %arg1, %c0_i32, %c0_i32_0 : i32, i32, i32
  }
  func.func @transform_3(%arg0: i32, %arg1: i32) -> (i32, i32, i32) {
    %c0_i32 = arith.constant 0 : i32
    %c0_i32_0 = arith.constant 0 : i32
    %c0_i32_1 = arith.constant 0 : i32
    return %arg1, %c0_i32, %c0_i32_0 : i32, i32, i32
  }
  func.func @transform_4(%arg0: i32, %arg1: i32) -> (i32, i32, i32) {
    %c0_i32 = arith.constant 0 : i32
    %c0_i32_0 = arith.constant 0 : i32
    %c0_i32_1 = arith.constant 0 : i32
    return %arg1, %c0_i32, %c0_i32_0 : i32, i32, i32
  }
  func.func @transform_5(%arg0: i32, %arg1: i32) -> (i32, i32, i32) {
    %c0_i32 = arith.constant 0 : i32
    %c0_i32_0 = arith.constant 0 : i32
    %c0_i32_1 = arith.constant 0 : i32
    return %arg1, %c0_i32, %c0_i32_0 : i32, i32, i32
  }
  func.func @transform_6(%arg0: i32, %arg1: i32) -> (i32, i32) {
    %c0_i32 = arith.constant 0 : i32
    %c0_i32_0 = arith.constant 0 : i32
    %c0_i32_1 = arith.constant 0 : i32
    return %c0_i32, %c0_i32_0 : i32, i32
  }
  func.func @transform_7(%arg0: i32, %arg1: i32) -> (i32, i32) {
    %c0_i32 = arith.constant 0 : i32
    %c0_i32_0 = arith.constant 0 : i32
    %c0_i32_1 = arith.constant 0 : i32
    return %c0_i32, %c0_i32_0 : i32, i32
  }
  func.func @transform_8(%arg0: i32, %arg1: i32) -> (i32, i32, i32) {
    %c0_i32 = arith.constant 0 : i32
    %c0_i32_0 = arith.constant 0 : i32
    %c0_i32_1 = arith.constant 0 : i32
    return %arg1, %c0_i32, %c0_i32_0 : i32, i32, i32
  }
  func.func @transform_9(%arg0: i32, %arg1: i32) -> (i32, i32) {
    %c0_i32 = arith.constant 0 : i32
    %c0_i32_0 = arith.constant 0 : i32
    %c0_i32_1 = arith.constant 0 : i32
    return %c0_i32, %c0_i32_0 : i32, i32
  }
  func.func @transform_10(%arg0: i32, %arg1: i32) -> (i32, i32, i32) {
    %c0_i32 = arith.constant 0 : i32
    %c0_i32_0 = arith.constant 0 : i32
    %c0_i32_1 = arith.constant 0 : i32
    return %arg0, %c0_i32, %c0_i32_0 : i32, i32, i32
  }
  func.func @transform_11(%arg0: i32, %arg1: i32) -> (i32, i32, i32) {
    %c0_i32 = arith.constant 0 : i32
    %c0_i32_0 = arith.constant 0 : i32
    return %arg1, %arg0, %c0_i32 : i32, i32, i32
  }
}

</mosaic_0001>

<bundles_post_ra>
// kernel: tpu_custom_call.1
= control target key start
LH: loop header
LB: loop body
LE: loop exit
PB: predicated region body
PF: predicated region fallthrough
CT: control target
= control target key end

     0   :  { %s2101_s0 = inlined_call_operand.vmem [shape: bf16[3,2,16,16], index: 0, kind: input, shape index: {}]   ;;  %s2102_s1 = inlined_call_operand.vmem [shape: f32[2,16,32], index: 1, kind: input, shape index: {}]   ;;  %s2103_s2 = inlined_call_operand.vmem [shape: bf16[3,32,16], index: 2, kind: input, shape index: {}]   ;;  %s2104_s3 = inlined_call_operand.vmem [shape: bf16[3,48,16], index: 3, kind: input, shape index: {}]   ;;  %s2105_s4 = inlined_call_operand.vmem [shape: f32[3,1,16], index: 4, kind: input, shape index: {}]   ;;  %s2106_s5 = inlined_call_operand.vmem [shape: f32[3,1,16], index: 5, kind: input, shape index: {}]   ;;  %s2107_s6 = inlined_call_operand.vmem [shape: f32[1,32], index: 6, kind: input, shape index: {}]   ;;  %s2108_s7 = inlined_call_operand.<no memory space> [shape: f32[1,1], index: 7, kind: input, shape index: {}]   ;;  %s2109_s8 = inlined_call_operand.vmem [shape: bf16[3,32,32], index: 8, kind: input, shape index: {}]   ;;  %s2110_s9 = inlined_call_operand.vmem [shape: f32[1,32], index: 9, kind: input, shape index: {}]   ;;  %s2111_s10 = inlined_call_operand.hbm [shape: f32[2,16,32], index: 10, kind: output, shape index: {0}]   ;;  %s2112_s11 = inlined_call_operand.hbm [shape: f32[3,2,16], index: 11, kind: output, shape index: {1}]  }
   0x1   :  { %2113 = sst [smem:[#allocation11_spill]] %s2101_s0  ;;  %v17_v0 = vstv %s2108_s7 }
   0x2   :  { %2114 = sst [smem:[#allocation12_spill]] %s2102_s1  ;;  %18 = vst [vmem:[#allocation4] sm:$0x1] %v17_v0 }
   0x3   :  { %2115 = sst [smem:[#allocation13_spill]] %s2103_s2 }
   0x4   :  { %19 = vsyncpa [#allocation6], 0 }
   0x5   :  { %20 = vsyncpa [#allocation8], 0 }
   0x6   :  { %22 = vsyncpa [#allocation8 + $0x1], 0  ;;  %s1838_s19 = smov 0   ;;  %s1840_s20 = smov 0  }
   0x7   :  { %s1842_s21 = smov 0   ;;  %s1844_s22 = smov 0  }
   0x8   :  { %s1846_s23 = smov 0   ;;  %s1848_s24 = smov 0  }
   0x9 LB: > { %s1427_s7 = sadd.s32 4294967295, %s1764_s24   ;;  %s1428_s25 = sadd.s32 4294967294, %s1764_s24   ;;  %s1764_s24 = sphi %s1848_s24, %s28_s24   ;;  %s1760_s23 = sphi %s1846_s23, %s2127_s23   ;;  %s1756_s22 = sphi %s1844_s22, %s2126_s22   ;;  %s1752_s21 = sphi %s1842_s21, %s2125_s21   ;;  %s1748_s20 = sphi %s1840_s20, %s2124_s20   ;;  %s1744_s19 = sphi %s1838_s19, %s2123_s19  }
   0xa   : > { %s37_s26 = sadd.s32 1, %s1760_s23  ;;  %s322_s27 = sadd.s32 1, %s1752_s21 }
   0xb   : > { %p38_p0 = scmp.ge.s32.totalorder %s37_s26, 3  ;;  %p332_p1 = scmp.ne.s32.totalorder %s1752_s21, %s1748_s20 }
   0xc   : > { %p1874_p2 = scmp.eq.s32.totalorder %s1427_s7, 2  ;;  %p338_p3 = scmp.ne.s32.totalorder %s1748_s20, %s1744_s19 }
   0xd   : > { %s2129_s26 = smov (%p38_p0, %s37_s26), 0  ;;  %p339_p5 = scmp.eq.s32.totalorder %s1428_s25, 2 }
   0xe   : > { %p1884_p4 = por %p1874_p2, %p332_p1  ;;  %s317_s30 = ssub.s32 %s1760_s23, %s2129_s26 }
   0xf   : > { %p1432_p6 = scmp.ge.s32.totalorder %s1764_s24, 1  ;;  %p320_p7 = scmp.eq.s32.totalorder %s317_s30, 0 }
  0x10   : > { %p1891_p8 = por %p339_p5, %p338_p3  ;;  %p426_p9 = scmp.lt.s32.totalorder %s1764_s24, 4 }
  0x11   : > { %s1897_s13 = scalar_select %p320_p7, %s1752_s21, %s322_s27  }
  0x12   : > { %s2118_s12 = scalar_select %p1891_p8, 1, 0 }
  0x13   : > { %p427_p10 = pnand %p1432_p6, %p426_p9 }
  0x14   : > { %s2119_s1 = sld [smem:[#allocation12_spill]] (!%p427_p10)  ;;  %p499_p11 = scmp.lt.s32.totalorder (!%p427_p10), %s1756_s22, 2 }
  0x15   : > { %430 = sbr.rel (%p427_p10) target bundleno = 1481 (0x5c9), region = 60  ;;  %s2120_s0 = sld [smem:[#allocation11_spill]] (!%p427_p10) }
  0x16   : > { %s2121_s2 = sld [smem:[#allocation13_spill]] (!%p427_p10)  ;;  %p1471_p12 = scmp.ne.s32.totalorder (!%p427_p10), %s1756_s22, 0 }
  0x1a   : > { %v1902_v1 = vld [vmem:[%s2119_s1] sm:$0xff]  ;;  %v1907_v2 = vld [vmem:[%s2119_s1 + $0x8] sm:$0xff]  ;;  %v1912_v3 = vld [vmem:[%s2119_s1 + $0x10] sm:$0xff]  ;;  %v1766_v4 = vmov 0.0   ;;  %vm1767_vm0 = vmmov 0   ;;  %s1931_s30 = scalar_select %p499_p11, %s1756_s22, 2 }
  0x1b   : > { %1515 = vmatprep.subr.bf16.mxu0 %v1766_v4  ;;  %1521 = vmatprep.subr.bf16.mxu1 %v1766_v4  ;;  %v576_v5 = vpack.c.bf16 %v1907_v2, %v1902_v1  ;;  %v1922_v6 = vld [vmem:[%s2119_s1 + $0x18] sm:$0xff]  ;;  %vm551_vm1 = vcmask 130048   ;;  %vm692_vm2 = vcmask 257024   ;;  %vm734_vm3 = vcmask 261120  }
  0x1c   : > { %v577_v7 = vpack.c.bf16 %v1922_v6, %v1912_v3  ;;  %1517 = vmatprep.mubr.msk.bf16.mxu0 %vm1767_vm0, %v1766_v4  ;;  %1523 = vmatprep.mubr.msk.bf16.mxu1 %vm1767_vm0, %v1766_v4  ;;  %s1483_s14 = sshll.u32 %s1931_s30, 4  ;;  %s528_s18 = scalar_lea.vmem %s2105_s4, %s1931_s30  ;;  %vm914_vm4 = vcmask 388352   ;;  %vm964_vm5 = vcmask 392192   ;;  %vm1064_vm6 = vcmask 261248  }
  0x1d   : > { %1516 = vmatpush3.bf16.msra.mxu0 %v576_v5  ;;  %s507_s17 = scalar_lea.vmem %s2120_s0, %s1483_s14  ;;  %s1940_s25 = scalar_lea.vmem %s2109_s8, %s1483_s14  ;;  %v1449_v46 = vld [vmem:[%s528_s18] ss:$0 sm:$0xff]  ;;  %vm1118_vm7 = vcmask 130112   ;;  %vm1129_vm8 = vcmask 1041409   ;;  %vm1132_vm9 = vcmask 123904  }
  0x1e   : > { %1522 = vmatpush3.bf16.msra.mxu1 %v577_v7  ;;  %v1943_v8 = vld [vmem:[%s507_s17] sm:$0xff]   ;;  %v1945_v9 = vld [vmem:[%s507_s17 + $0x8] sm:$0xff]   ;;  %s520_s16 = scalar_lea.vmem %s2121_s2, %s1483_s14  ;;  %s1565_s7 = smul.u32 24, %s1931_s30 }
  0x1f   : > { %1535 = vmatprep.subr.bf16.mxu1 %v1766_v4  ;;  %v1639_v10 = vld [vmem:[%s520_s16 + $0x8] sm:$0xff]   ;;  %v1640_v11 = vld [vmem:[%s520_s16] sm:$0xff]   ;;  %v549_v12 = vunpack.c.l.bf16 %v1945_v9  ;;  %v547_v13 = vunpack.c.l.bf16 %v1943_v8  ;;  %v550_v14 = vunpack.c.h.bf16 %v1945_v9  ;;  %v548_v15 = vunpack.c.h.bf16 %v1943_v8  ;;  %s1768_s14 = smov 32   ;;  %s1769_s17 = smov 112  }
  0x20   : > { %1518 = vmatmul.mubr.msk.bf16.vlgmr.msra.gmra.mxu0 %vm551_vm1, %v1943_v8  ;;  %1527 = vmatprep.subr.bf16.mxu0 %v1639_v10  ;;  %s525_s16 = scalar_lea.vmem %s2104_s3, %s1565_s7  ;;  %s531_s27 = scalar_lea.vmem %s2106_s5, %s1931_s30 }
  0x21   : > { %1524 = vmatmul.mubr.msk.bf16.vlgmr.msra.gmra.mxu1 %vm551_vm1, %v1945_v9  ;;  %1528 = vmatpush3.bf16.msra.mxu0 %v1639_v10  ;;  %v558_v16 = vsel %vm551_vm1, %v549_v12, 0.0  ;;  %v552_v17 = vsel %vm551_vm1, %v547_v13, 0.0  ;;  %v561_v18 = vsel %vm551_vm1, %v550_v14, 0.0  ;;  %v555_v19 = vsel %vm551_vm1, %v548_v15, 0.0  ;;  %v1643_v15 = vld [vmem:[%s525_s16 + $0x10] sm:$0xff]   ;;  %s1770_s30 = smov 16  }
  0x22   : > { %1537 = vmatprep.mubr.msk.bf16.mxu1 %vm1767_vm0, %v1766_v4  ;;  %1529 = vmatprep.subr.bf16.mxu0 %v1640_v11 }
  0x23   : > { %559 = vadd.xlane.f32.xlu1 %v558_v16  ;;  %553 = vadd.xlane.f32.xlu0 %v552_v17 }
  0x25   : > { %1530 = vmatpush3.bf16.msra.mxu0 %v1640_v11 }
  0x26   : > { %1541 = vmatprep.subr.bf16.mxu0 %v1766_v4 }
  0x27   : > { %562 = vadd.xlane.f32.xlu1 %v561_v18  ;;  %556 = vadd.xlane.f32.xlu0 %v555_v19 }
  0xac   : > { %v560_v38 = vpop.xlane.xlu1 %559  ;;  %v554_v39 = vpop.xlane.xlu0 %553 }
  0xad   : > { %v566_v40 = vadd.f32 1.0, %v560_v38  ;;  %v564_v42 = vadd.f32 1.0, %v554_v39 }
  0xaf   : > { %1650 = vrcp.f32 %v566_v40 }
  0xb0   : > { %v563_v41 = vpop.xlane.xlu1 %562  ;;  %v557_v43 = vpop.xlane.xlu0 %556  ;;  %1652 = vrcp.f32 %v564_v42 }
  0xb1   : > { %v567_v44 = vadd.f32 1.0, %v563_v41  ;;  %v565_v45 = vadd.f32 1.0, %v557_v43 }
  0xb3   : > { %1654 = vrcp.f32 %v567_v44 }
  0xb4   : > { %1656 = vrcp.f32 %v565_v45 }
  0xbc   : > { %v1981_v47 = vpop.eup %1650 }
  0xbd   : > { %v1983_v50 = vpop.eup %1652 }
  0xc0   : > { %v1986_v54 = vpop.eup %1654 }
  0xc1   : > { %v1989_v59 = vpop.eup %1656 }
  0xe0   : > { %v620_v20 = vpop.f32.mrf.mxu0 }
  0xe1   : > { %v669_v21 = vpop.f32.mrf.mxu1  ;;  %v621_v22 = vadd.f32 %v620_v20, %v1902_v1  ;;  %v1644_v20 = vld [vmem:[%s525_s16 + $0x8] sm:$0xff]  }
  0xe2   : > { %v670_v23 = vadd.f32 %v669_v21, %v1912_v3  ;;  %v1519_v24 = vpop.f32.mrf.mxu0  ;;  %v1645_v21 = vld [vmem:[%s525_s16] sm:$0xff]  }
  0xe3   : > { %v1525_v25 = vpop.f32.mrf.mxu1  ;;  %v1486_v26 = vpack.c.bf16 %v621_v22, %v621_v22 }
  0xe4   : > { %v1488_v27 = vpack.c.bf16 %v670_v23, %v670_v23  ;;  %v623_v28 = vpop.f32.mrf.mxu0 }
  0xe5   : > { %v672_v29 = vpop.f32.mrf.mxu1  ;;  %693 = vst.msk [vmem:[#allocation2] sm:$0xf] %vm692_vm2, %v1486_v26  ;;  %v624_v30 = vadd.f32 %v623_v28, %v1907_v2 }
  0xe6   : > { %695 = vst.msk [vmem:[#allocation2 + $0x8] sm:$0xf] %vm692_vm2, %v1488_v27  ;;  %v673_v31 = vadd.f32 %v672_v29, %v1922_v6  ;;  %v1520_v32 = vpop.f32.mrf.mxu0 }
  0xe7   : > { %v1526_v33 = vpop.f32.mrf.mxu1  ;;  %v1487_v34 = vpack.c.bf16 %v624_v30, %v624_v30 }
  0xe8   : > { %v1489_v35 = vpack.c.bf16 %v673_v31, %v673_v31 }
  0xe9   : > { %694 = vst.msk [vmem:[#allocation2 + $0x4] sm:$0xf] %vm692_vm2, %v1487_v34 }
  0xea   : > { %696 = vst.msk [vmem:[#allocation2 + $0xc] sm:$0xf] %vm692_vm2, %v1489_v35 }
  0xf0   : > { %v1641_v36 = vld [vmem:[#allocation2] sm:$0xff]  }
  0xf1   : > { %v1642_v37 = vld [vmem:[#allocation2 + $0x8] sm:$0xff]   ;;  %1531 = vmatprep.mubr.msk.bf16.mxu0 %vm734_vm3, %v1641_v36 }
  0xf2   : > { %1532 = vmatmul.mubr.msk.bf16.vlgmr.msra.gmra.mxu0 %vm734_vm3, %v1642_v37 }
  0xf3   : > { %1543 = vmatprep.mubr.msk.bf16.mxu0 %vm1767_vm0, %v1766_v4 }
 0x1b2   : > { %v1533_v48 = vpop.f32.mrf.mxu0 }
 0x1b3   : > { %v784_v49 = vadd.f32 %v1533_v48, %v1449_v46 }
 0x1b4   : > { %v775_v51 = vpop.f32.mrf.mxu0 }
 0x1b5   : > { %v792_v52 = vmul.f32 %v1981_v47, %v784_v49  ;;  %v776_v53 = vadd.f32 %v1449_v46, %v775_v51 }
 0x1b6   : > { %v1534_v55 = vpop.f32.mrf.mxu0 }
 0x1b7   : > { %v796_v56 = vmax.f32 %v792_v52, 0.0  ;;  %v790_v57 = vmul.f32 %v1983_v50, %v776_v53  ;;  %v787_v58 = vadd.f32 %v1534_v55, %v1449_v46 }
 0x1b8   : > { %v778_v60 = vpop.f32.mrf.mxu0 }
 0x1b9   : > { %v794_v61 = vmax.f32 %v790_v57, 0.0  ;;  %v793_v62 = vmul.f32 %v1986_v54, %v787_v58  ;;  %v779_v63 = vadd.f32 %v1449_v46, %v778_v60  ;;  %v800_v0 = vadd.f32 %v796_v56, %v1912_v3 }
 0x1bb   : > { %v797_v4 = vmax.f32 %v793_v62, 0.0  ;;  %v791_v5 = vmul.f32 %v1989_v59, %v779_v63  ;;  %v798_v7 = vadd.f32 %v794_v61, %v1902_v1  ;;  %804 = vst.msk [vmem:[#allocation3 + $0x10] sm:$0xff] %vm551_vm1, %v800_v0  ;;  %v1470_v63 = vld [vmem:[%s2107_s6] ss:$0 sm:$0xff] }
 0x1bd   : > { %v795_v10 = vmax.f32 %v791_v5, 0.0  ;;  %v807_v11 = vpack.c.bf16 %v797_v4, %v796_v56  ;;  %802 = vst.msk [vmem:[#allocation3] sm:$0xff] %vm551_vm1, %v798_v7  ;;  %v801_v12 = vadd.f32 %v797_v4, %v1922_v6 }
 0x1bf   : > { %1542 = vmatpush3.bf16.msra.mxu0 %v807_v11  ;;  %v806_v13 = vpack.c.bf16 %v795_v10, %v794_v61  ;;  %v799_v14 = vadd.f32 %v795_v10, %v1907_v2  ;;  %805 = vst.msk [vmem:[#allocation3 + $0x18] sm:$0xff] %vm551_vm1, %v801_v12 }
 0x1c1   : > { %1536 = vmatpush3.bf16.msra.mxu1 %v806_v13  ;;  %803 = vst.msk [vmem:[#allocation3 + $0x8] sm:$0xff] %vm551_vm1, %v799_v14 }
 0x1c2   : > { %1544 = vmatmul.mubr.msk.bf16.vlgmr.msra.gmra.mxu0 %vm551_vm1, %v1945_v9  ;;  %1547 = vmatprep.subr.bf16.mxu1 %v1643_v15 }
 0x1c4   : > { %1538 = vmatmul.mubr.msk.bf16.vlgmr.msra.gmra.mxu1 %vm551_vm1, %v1943_v8 }
 0x1c5   : > { %1548 = vmatpush3.bf16.msra.mxu1 %v1643_v15 }
 0x1c6   : > { %1549 = vmatprep.subr.bf16.mxu1 %v1644_v20 }
 0x1c9   : > { %1550 = vmatpush3.bf16.msra.mxu1 %v1644_v20 }
 0x1ca   : > { %1551 = vmatprep.subr.bf16.mxu1 %v1645_v21 }
 0x1cd   : > { %1552 = vmatpush3.bf16.msra.mxu1 %v1645_v21 }
 0x282   : > { %v883_v16 = vpop.f32.mrf.mxu0 }
 0x283   : > { %v884_v17 = vadd.f32 %v883_v16, %v796_v56 }
 0x284   : > { %v842_v18 = vpop.f32.mrf.mxu1  ;;  %v1545_v19 = vpop.f32.mrf.mxu0 }
 0x285   : > { %v1492_v22 = vpack.c.bf16 %v884_v17, %v884_v17  ;;  %v843_v23 = vadd.f32 %v842_v18, %v794_v61  ;;  %v1096_v61 = vld [vmem:[#allocation4] sm:$0x1]  ;;  %v1107_v19 = vlaneseq }
 0x286   : > { %v1539_v9 = vpop.f32.mrf.mxu1  ;;  %v886_v24 = vpop.f32.mrf.mxu0  ;;  %1566 = vpush %v1096_v61 }
 0x287   : > { %v1490_v8 = vpack.c.bf16 %v843_v23, %v843_v23  ;;  %906 = vrot.lane.b32.xlu1 %v1492_v22, %s1768_s14  ;;  %v887_v29 = vadd.f32 %v886_v24, %v797_v4  ;;  %v1108_v20 = vand.u32 127, %v1107_v19  ;;  %v1110_v23 = vshrl.u32 %v1107_v19, 7 }
 0x288   : > { %v845_v25 = vpop.f32.mrf.mxu1  ;;  %v1546_v26 = vpop.f32.mrf.mxu0 }
 0x289   : > { %v846_v27 = vadd.f32 %v845_v25, %v795_v10  ;;  %902 = vrot.lane.b32.xlu0 %v1490_v8, %s1768_s14  ;;  %v1493_v31 = vpack.c.bf16 %v887_v29, %v887_v29  ;;  %v1113_v22 = vadd.s32 4294967288, %v1108_v20 }
 0x28a   : > { %v1540_v28 = vpop.f32.mrf.mxu1 }
 0x28b   : > { %v1491_v30 = vpack.c.bf16 %v846_v27, %v846_v27  ;;  %v1116_v25 = vsub.s32 %v1113_v22, %v1110_v23  ;;  %v1111_v27 = vsub.s32 %v1108_v20, %v1110_v23 }
 0x28d   : > { %904 = vrot.lane.b32.xlu1 %v1491_v30, %s1768_s14  ;;  %1032 = vrot.lane.b32.xlu0 %v1902_v1, %s1769_s17 }
 0x291   : > { %908 = vrot.lane.b32.xlu1 %v1493_v31, %s1768_s14  ;;  %1036 = vrot.lane.b32.xlu0 %v1912_v3, %s1769_s17 }
 0x295   : > { %1034 = vrot.lane.b32.xlu1 %v1907_v2, %s1769_s17  ;;  %v1462_v2 = vld [vmem:[%s531_s27] ss:$0 sm:$0xff] }
 0x299   : > { %1038 = vrot.lane.b32.xlu1 %v1922_v6, %s1769_s17  ;;  %s495_s17 = sand.u32 1, %s1748_s20  }
 0x29a   : > { %s2031_s18 = sshll.u32 %s495_s17, 1 }
 0x29b   : > { %s497_s7 = scalar_lea.vmem [#allocation7], %s2031_s18 }
 0x2b7   : > { %s1567_s14 = spop %1566 }
 0x2b8   : > { %v1098_v9 = vstv %s1567_s14 }
 0x2f9   : > { %v907_v32 = vpop.permute.xlu1 %906 }
 0x2fa   : > { %917 = vst.msk [vmem:[#allocation2 + $0x8] sm:$0xf] %vm914_vm4, %v907_v32 }
 0x2fb   : > { %v903_v33 = vpop.permute.xlu0 %902 }
 0x2fc   : > { %915 = vst.msk [vmem:[#allocation2] sm:$0xf] %vm914_vm4, %v903_v33 }
 0x2ff   : > { %v905_v34 = vpop.permute.xlu1 %904  ;;  %v1033_v39 = vpop.permute.xlu0 %1032 }
 0x300   : > { %916 = vst.msk [vmem:[#allocation2 + $0x4] sm:$0xf] %vm914_vm4, %v905_v34 }
 0x303   : > { %v909_v35 = vpop.permute.xlu1 %908  ;;  %v1037_v55 = vpop.permute.xlu0 %1036 }
 0x304   : > { %918 = vst.msk [vmem:[#allocation2 + $0xc] sm:$0xf] %vm914_vm4, %v909_v35 }
 0x307   : > { %v1646_v1 = vld [vmem:[#allocation2] sm:$0xff]   ;;  %v1035_v48 = vpop.permute.xlu1 %1034 }
 0x308   : > { %1553 = vmatprep.mubr.msk.bf16.mxu1 %vm964_vm5, %v1646_v1 }
 0x30b   : > { %v1647_v36 = vld [vmem:[#allocation2 + $0x8] sm:$0xff]   ;;  %v1039_v60 = vpop.permute.xlu1 %1038 }
 0x30c   : > { %1554 = vmatmul.mubr.msk.bf16.vlgmr.msra.gmra.mxu1 %vm964_vm5, %v1647_v36 }
 0x3cc   : > { %v1555_v3 = vpop.f32.mrf.mxu1 }
 0x3cd   : > { %v1014_v6 = vadd.f32 %v1555_v3, %v1462_v2 }
 0x3ce   : > { %v1005_v37 = vpop.f32.mrf.mxu1 }
 0x3cf   : > { %v1006_v38 = vadd.f32 %v1462_v2, %v1005_v37  ;;  %v1022_v41 = vmul.f32 %v1981_v47, %v1014_v6 }
 0x3d0   : > { %v1556_v40 = vpop.f32.mrf.mxu1 }
 0x3d1   : > { %v1020_v42 = vmul.f32 %v1983_v50, %v1006_v38  ;;  %v1017_v43 = vadd.f32 %v1556_v40, %v1462_v2  ;;  %v1026_v51 = vmax.f32 %v1022_v41, 0.0 }
 0x3d2   : > { %v1008_v44 = vpop.f32.mrf.mxu1 }
 0x3d3   : > { %v1024_v45 = vmax.f32 %v1020_v42, 0.0  ;;  %v1009_v46 = vadd.f32 %v1462_v2, %v1008_v44  ;;  %v1023_v49 = vmul.f32 %v1986_v54, %v1017_v43  ;;  %v1046_v57 = vadd.f32 %v1037_v55, %v1026_v51 }
 0x3d5   : > { %v1021_v52 = vmul.f32 %v1989_v59, %v1009_v46  ;;  %v1044_v53 = vadd.f32 %v1033_v39, %v1024_v45  ;;  %v1027_v58 = vmax.f32 %v1023_v49, 0.0 }
 0x3d7   : > { %v1025_v56 = vmax.f32 %v1021_v52, 0.0  ;;  %1052 = vrot.lane.b32.xlu0 %v1044_v53, %s1770_s30  ;;  %v1047_v50 = vadd.f32 %v1039_v60, %v1027_v58 }
 0x3d9   : > { %v1045_v47 = vadd.f32 %v1035_v48, %v1025_v56 }
 0x3db   : > { %1054 = vrot.lane.b32.xlu1 %v1045_v47, %s1770_s30  ;;  %1056 = vrot.lane.b32.xlu0 %v1046_v57, %s1770_s30 }
 0x3df   : > { %1058 = vrot.lane.b32.xlu1 %v1047_v50, %s1770_s30 }
 0x449   : > { %v1053_v54 = vpop.permute.xlu0 %1052 }
 0x44a   : > { %1065 = vst.msk [vmem:[#allocation3] sm:$0xff] %vm1064_vm6, %v1053_v54 }
 0x44d   : > { %v1055_v62 = vpop.permute.xlu1 %1054  ;;  %v1057_v59 = vpop.permute.xlu0 %1056 }
 0x44e   : > { %1066 = vst.msk [vmem:[#allocation3 + $0x8] sm:$0xff] %vm1064_vm6, %v1055_v62  ;;  %1067 = vst.msk [vmem:[#allocation3 + $0x10] sm:$0xff] %vm1064_vm6, %v1057_v59 }
 0x451   : > { %v1059_v0 = vpop.permute.xlu1 %1058  ;;  %v1069_v4 = vld [vmem:[#allocation3] sm:$0xff] }
 0x452   : > { %1068 = vst.msk [vmem:[#allocation3 + $0x18] sm:$0xff] %vm1064_vm6, %v1059_v0  ;;  %v1080_v5 = vmul.f32 %v1470_v63, %v1069_v4 }
 0x454   : > { %v1084_v7 = vsel %vm734_vm3, %v1080_v5, 0.0 }
 0x455   : > { %1085 = vadd.xlane.f32.xlu0 %v1084_v7  ;;  %v1071_v10 = vld [vmem:[#allocation3 + $0x10] sm:$0xff]  ;;  %v1070_v11 = vld [vmem:[#allocation3 + $0x8] sm:$0xff] }
 0x456   : > { %v1082_v12 = vmul.f32 %v1470_v63, %v1071_v10  ;;  %v1081_v13 = vmul.f32 %v1470_v63, %v1070_v11 }
 0x458   : > { %v1090_v14 = vsel %vm734_vm3, %v1082_v12, 0.0  ;;  %v1087_v15 = vsel %vm734_vm3, %v1081_v13, 0.0 }
 0x459   : > { %1091 = vadd.xlane.f32.xlu0 %v1090_v14  ;;  %1088 = vadd.xlane.f32.xlu1 %v1087_v15  ;;  %v1072_v16 = vld [vmem:[#allocation3 + $0x18] sm:$0xff] }
 0x45a   : > { %v1083_v17 = vmul.f32 %v1470_v63, %v1072_v16 }
 0x45c   : > { %v1093_v18 = vsel %vm734_vm3, %v1083_v17, 0.0 }
 0x45d   : > { %1094 = vadd.xlane.f32.xlu0 %v1093_v18 }
 0x4de   : > { %v1086_v21 = vpop.xlane.xlu0 %1085 }
 0x4df   : > { %v1099_v28 = vadd.f32 %v1098_v9, %v1086_v21 }
 0x4e1   : > { %v1112_v33 = vrot.slane %v1099_v28, %v1111_v27 }
 0x4e2   : > { %v1092_v24 = vpop.xlane.xlu0 %1091  ;;  %v1089_v8 = vpop.xlane.xlu1 %1088 }
 0x4e3   : > { %v1100_v26 = vadd.f32 %v1098_v9, %v1089_v8  ;;  %v1101_v29 = vadd.f32 %v1098_v9, %v1092_v24 }
 0x4e5   : > { %v1117_v31 = vrot.slane %v1100_v26, %v1116_v25  ;;  %v1123_v34 = vrot.slane %v1101_v29, %v1111_v27 }
 0x4e6   : > { %v1095_v30 = vpop.xlane.xlu0 %1094 }
 0x4e7   : > { %v1102_v32 = vadd.f32 %v1098_v9, %v1095_v30  ;;  %v1119_v1 = vsel %vm1118_vm7, %v1117_v31, %v1112_v33 }
 0x4e9   : > { %v1127_v35 = vrot.slane %v1102_v32, %v1116_v25  ;;  %1137 = sbr.rel (%p1471_p12) target bundleno = 1265 (0x4f1), region = 64 }
 0x4eb   : > { %v1128_v36 = vsel %vm1118_vm7, %v1127_v35, %v1123_v34 }
 0x4ec   : > { %v1130_v2 = vsel %vm1129_vm8, %v1128_v36, %v1119_v1 }
 0x4ed   : > { %1133 = vst.msk [vmem:[%s497_s7] sm:$0x3] %vm1132_vm9, %v1130_v2 }
 0x4ee   : > { %v1472_v3 = vld [vmem:[%s2110_s9] ss:$0 sm:$0xff] }
 0x4ef   : > { %1145 = vst.msk [vmem:[#allocation5] sm:$0xff] %vm734_vm3, %v1472_v3  ;;  %1146 = vst.msk [vmem:[#allocation5 + $0x8] sm:$0xff] %vm734_vm3, %v1472_v3 }
 0x4f0   : > { %1147 = vst.msk [vmem:[#allocation5 + $0x10] sm:$0xff] %vm734_vm3, %v1472_v3  ;;  %1148 = vst.msk [vmem:[#allocation5 + $0x18] sm:$0xff] %vm734_vm3, %v1472_v3 }
 0x4f1 PF: > { %v1658_v6 = vld [vmem:[%s1940_s25 + $0x8] sm:$0xff]   ;;  %v1149_v37 = vpack.c.bf16 %v1070_v11, %v1069_v4  ;;  %v1659_v38 = vld [vmem:[%s1940_s25] sm:$0xff]   ;;  %v1150_v39 = vpack.c.bf16 %v1072_v16, %v1071_v10  ;;  %s1479_s15 = sshll.u32 %s1756_s22, 5  ;;  %s1266_s27 = sshll.u32 %s497_s7, 4  ;;  %s1267_s27 = int_to_ptr.vmem [resolvable:$true] %s1266_s27 }
 0x4f2   : > { %1557 = vmatprep.subr.bf16.mxu0 %v1658_v6  ;;  %s1264_s18 = scalar_lea.hbm %s2112_s11, %s1479_s15  ;;  %s1235_s30 = scalar_lea.sflag [#allocation8], %s495_s17 }
 0x4f3   : > { %1561 = vmatprep.mubr.msk.bf16.mxu0 %vm734_vm3, %v1149_v37  ;;  %1558 = vmatpush3.bf16.msra.mxu0 %v1658_v6  ;;  %s1660_s0 = scalar_lea.vmem %s1267_s27, 32  ;;  %s1771_s25 = smov [#allocation7]  }
 0x4f4   : > { %1559 = vmatprep.subr.bf16.mxu0 %v1659_v38  ;;  %p1661_p13 = scmp.ne.s32.totalorder %s1267_s27, %s1660_s0  ;;  %s1664_s1 = sshll.u32 %s1771_s25, 4  ;;  %s1665_s1 = int_to_ptr.vmem [resolvable:$false] %s1664_s1 }
 0x4f5   : > { %s1666_s2 = scalar_lea.vmem %s1665_s1, 64  ;;  %p1667_p3 = scmp.lt.s32.totalorder %s1267_s27, %s1665_s1 }
 0x4f6   : > { %p1662_p0 = pnand %p1661_p13, %p1884_p4  ;;  %p1668_p5 = scmp.lt.s32.totalorder %s1666_s2, %s1660_s0 }
 0x4f7   : > { %1560 = vmatpush3.bf16.msra.mxu0 %v1659_v38 }
 0x4f8   : > { %p1663_p1 = pneg %p1662_p0  ;;  %p1669_p6 = por %p1668_p5, %p1667_p3 }
 0x4fa   : > { %1562 = vmatmul.mubr.msk.bf16.vlgmr.msra.gmra.mxu0 %vm734_vm3, %v1150_v39  ;;  %p1670_p7 = pnand %p1669_p6, %p1663_p1 }
 0x4fc   : > { %1673 = shalt.err (!%p1670_p7)
}
 0x4fd   : > { %s1674_s22 = scalar_lea.hbm %s1264_s18, 32  ;;  %s1678_s15 = scalar_lea.hbm %s2112_s11, 96 }
 0x4fe   : > { %p1675_p9 = scmp.ne.s32.totalorder %s1264_s18, %s1674_s22  ;;  %p1679_p12 = scmp.lt.s32.totalorder %s1264_s18, %s2112_s11 }
 0x4ff   : > { %p1680_p13 = scmp.lt.s32.totalorder %s1678_s15, %s1674_s22 }
 0x500   : > { %p1676_p10 = pnand %p1675_p9, %p1884_p4 }
 0x501   : > { %p1681_p0 = por %p1680_p13, %p1679_p12 }
 0x502   : > { %p1677_p11 = pneg %p1676_p10 }
 0x504   : > { %p1682_p8 = pnand %p1681_p0, %p1677_p11 }
 0x506   : > { %1685 = shalt.err (!%p1682_p8)
}
 0x507   : > { %1570 = dma.vmem_to_hbm [thread:$0]  (%p1884_p4), %s1267_s27, 32, %s1264_s18, %s1235_s30   ;;  %v1224_v40 = vld [vmem:[#allocation5 + $0x10] sm:$0xff]  ;;  %v1222_v42 = vld [vmem:[#allocation5] sm:$0xff]  ;;  %v1225_v45 = vld [vmem:[#allocation5 + $0x18] sm:$0xff] }
 0x508   : > { %s1772_s0 = smov [#allocation5]   ;;  %v1223_v49 = vld [vmem:[#allocation5 + $0x8] sm:$0xff] }
 0x509   : > { %s1249_s1 = sshll.u32 %s1772_s0, 4  ;;  %s1250_s1 = int_to_ptr.vmem [resolvable:$true] %s1249_s1 }
 0x50a   : > { %s1686_s2 = scalar_lea.vmem %s1250_s1, 512  ;;  %p1693_p3 = scmp.lt.s32.totalorder %s1250_s1, %s1250_s1 }
 0x50b   : > { %p1687_p4 = scmp.ne.s32.totalorder %s1250_s1, %s1686_s2  ;;  %p1694_p5 = scmp.lt.s32.totalorder %s1686_s2, %s1686_s2 }
 0x50d   : > { %p1688_p8 = pnand %p1687_p4, %p1874_p2  ;;  %p1695_p6 = por %p1694_p5, %p1693_p3 }
 0x50f   : > { %p1689_p1 = pneg %p1688_p8 }
 0x511   : > { %p1696_p7 = pnand %p1695_p6, %p1689_p1 }
 0x5ba   : > { %v1563_v41 = vpop.f32.mrf.mxu0 }
 0x5bb   : > { %v1228_v43 = vadd.f32 %v1563_v41, %v1224_v40 }
 0x5bc   : > { %v1207_v44 = vpop.f32.mrf.mxu0 }
 0x5bd   : > { %1232 = vst.msk [vmem:[#allocation5 + $0x10] sm:$0xff] %vm734_vm3, %v1228_v43  ;;  %v1226_v46 = vadd.f32 %v1222_v42, %v1207_v44 }
 0x5be   : > { %v1564_v48 = vpop.f32.mrf.mxu0 }
 0x5bf   : > { %1230 = vst.msk [vmem:[#allocation5] sm:$0xff] %vm734_vm3, %v1226_v46  ;;  %v1229_v51 = vadd.f32 %v1564_v48, %v1225_v45 }
 0x5c0   : > { %v1210_v52 = vpop.f32.mrf.mxu0 }
 0x5c1   : > { %1233 = vst.msk [vmem:[#allocation5 + $0x18] sm:$0xff] %vm734_vm3, %v1229_v51  ;;  %v1227_v53 = vadd.f32 %v1223_v49, %v1210_v52 }
 0x5c3   : > { %1231 = vst.msk [vmem:[#allocation5 + $0x8] sm:$0xff] %vm734_vm3, %v1227_v53 }
 0x5c4   : > { %1699 = shalt.err (!%p1696_p7)
}
 0x5c5   : > { %s1773_s29 = smov 128   ;;  %s1774_s18 = smov 8  }
 0x5c6   : > { %1569 = dma.vmem_to_hbm [thread:$0]  (%p1874_p2), %s1250_s1, 512, %s2111_s10, [#allocation6], %s1773_s29, %s1773_s29, %s1774_s18  }
 0x5c7   : > { %1735 = dma.done.wait (%p1874_p2), [#allocation6], 512  }
 0x5c8   : > { %1737 = vsyncadd (%p1874_p2), [#allocation6], 4294966784 }
 0x5c9 PF: > { %p1580_p9 = scmp.ge.s32.totalorder %s1764_s24, 2  ;;  %s1282_s25 = sand.u32 1, %s1744_s19  }
 0x5ca   : > { %p2122_p10 = scmp.ne.s32.totalorder %s2118_s12, 0  ;;  %s1283_s22 = scalar_lea.sflag [#allocation8], %s1282_s25 }
 0x5cc   : > { %p1575_p11 = pnand %p1580_p9, %p2122_p10 }
 0x5ce   : > { %p1576_p12 = pneg %p1575_p11 }
 0x5d0   : > { %1739 = dma.done.wait (%p1576_p12), %s1283_s22, 32  }
 0x5d1   : > { %1741 = vsyncadd (%p1576_p12), %s1283_s22, 4294967264  ;;  %s28_s24 = sadd.s32 1, %s1764_s24   ;;  %s2123_s19 = smov %s1748_s20 }
 0x5d2   : > { %p25_p13 = scmp.ge.s32.totalorder %s28_s24, 5   ;;  %s2124_s20 = smov %s1752_s21 }
 0x5d3   : > { %s2125_s21 = smov %s1897_s13  ;;  %s2126_s22 = smov %s1760_s23 }
 0x5d4   : > { %s2127_s23 = smov %s2129_s26  ;;  %27 = sbr.rel (!%p25_p13) target bundleno = 9 (0x9), region = 127 }
 0x5d9   :  { %1288 = vsyncpa [#allocation6], 1 }
 0x5da   :  { %1290 = vsyncpa [#allocation6 + $0x1], 1 }
 0x5db   :  { %1291 = vsyncpa [#allocation8], 1 }
 0x5dc   :  { %1293 = vsyncpa [#allocation8 + $0x1], 1 }

</bundles_post_ra>
